<compile_context>
chip_gen: v5e
topology: v5e:2x2
jax: 0.10.0
libtpu: 0.0.40
codegen_flags: <defaults>
</compile_context>

<pallas_src>
import jax
import jax.numpy as jnp
from jax.experimental import pallas as pl
from jax.experimental.pallas import tpu as pltpu

EPS = 1e-5  # nn.LayerNorm default eps


def _mlp_kernel(x_ref, wt_ref, b_ref, o_ref, xn_ref):
    # x_ref : (tm, D_in) tile of rows (input dtype)
    # wt_ref: (D_in, tn) folded weight gamma[:,None] * W^T, bf16
    # b_ref : (1, tn)    folded bias  beta @ W^T + b, f32
    # xn_ref: (tm, D_in) VMEM scratch holding the normalized rows (matmul dtype)
    j = pl.program_id(1)

    # LayerNorm only once per row tile (j == 0); reused for every column tile.
    @pl.when(j == 0)
    def _():
        xf = x_ref[...].astype(jnp.float32)
        mean = jnp.mean(xf, axis=-1, keepdims=True)
        centered = xf - mean
        var = jnp.mean(centered * centered, axis=-1, keepdims=True)  # biased var
        xn_ref[...] = (centered * jax.lax.rsqrt(var + EPS)).astype(xn_ref.dtype)

    # bf16 MXU matmul with f32 accumulation; gamma/beta already folded into W/b.
    y = jnp.dot(xn_ref[...], wt_ref[...], preferred_element_type=jnp.float32)
    o_ref[...] = (y + b_ref[...]).astype(o_ref.dtype)


def prepare_mlp_params(gamma, beta, weight, bias, *, matmul_dtype=jnp.bfloat16):
    """One-time parameter prep (call once, outside the hot path).

    Folds the LayerNorm affine into the linear layer:
        y = ((x-mu)/sigma * gamma + beta) @ W^T + b
          = ((x-mu)/sigma) @ (gamma[:,None] * W^T) + (beta @ W^T + b)
    and pre-transposes / downcasts the weight for the MXU.
    """
    wt = weight.T.astype(jnp.float32)                                # (D_in, D_out)
    wt_folded = (gamma.astype(jnp.float32)[:, None] * wt).astype(matmul_dtype)
    b_folded = (beta.astype(jnp.float32) @ wt
                + bias.astype(jnp.float32)).reshape(1, -1)           # (1, D_out) f32
    return wt_folded, b_folded


def _pick_tile(n, candidates):
    for c in candidates:
        if c <= n and n % c == 0:
            return c
    return n  # fall back to the full dimension (always a legal block)


def mlp_forward(x, wt_folded, b_folded):
    """x: (B, S, D_in); wt_folded: (D_in, D_out) bf16; b_folded: (1, D_out) f32."""
    B, S, D_in = x.shape
    D_out = wt_folded.shape[1]
    rows = B * S
    x2 = x.reshape(rows, D_in)

    # Row tile: as large as reasonable, 256-aligned when possible (v6e/v7x MXU),
    # 128 fine on v5e. Sub-32-bit inputs need sublane tiles that are multiples of 16.
    if x2.dtype.itemsize < 4:
        tm_candidates = (512, 256, 128, 64, 32, 16)
    else:
        tm_candidates = (512, 256, 128, 64, 32, 16, 8)
    tm = _pick_tile(rows, tm_candidates)
    # Output-column tile: lane-dense multiple of 128 so the weight block stays
    # (D_in, tn) and VMEM use is bounded as D grows.
    tn = _pick_tile(D_out, (512, 256, 128))

    # Rough double-buffered VMEM estimate with headroom (portable v5e/v6e/v7x).
    est = (2 * tm * D_in * x2.dtype.itemsize           # x tiles
           + 2 * D_in * tn * wt_folded.dtype.itemsize  # weight tiles
           + 2 * tn * 4                                # bias tiles
           + 2 * tm * tn * x2.dtype.itemsize           # output tiles
           + tm * D_in * wt_folded.dtype.itemsize)     # xn scratch
    vmem_limit = int(min(max(4 * est, 32 << 20), 64 << 20))

    out = pl.pallas_call(
        _mlp_kernel,
        out_shape=jax.ShapeDtypeStruct((rows, D_out), x.dtype),
        grid=(rows // tm, D_out // tn),
        in_specs=[
            pl.BlockSpec((tm, D_in), lambda i, j: (i, 0)),   # x row tile (const in j)
            pl.BlockSpec((D_in, tn), lambda i, j: (0, j)),   # folded W^T column tile
            pl.BlockSpec((1, tn), lambda i, j: (0, j)),      # folded bias tile
        ],
        out_specs=pl.BlockSpec((tm, tn), lambda i, j: (i, j)),
        scratch_shapes=[pltpu.VMEM((tm, D_in), wt_folded.dtype)],
        compiler_params=pltpu.CompilerParams(
            # j must be sequential: the normalized-row scratch is computed at
            # j == 0 and reused for j = 1..nj-1.  Row axis splits across cores.
            dimension_semantics=("parallel", "arbitrary"),
            vmem_limit_bytes=vmem_limit,
        ),
    )(x2, wt_folded, b_folded)

    return out.reshape(B, S, D_out)


if __name__ == "__main__":
    # Small shapes consistent with the module: embedding_dim=256, batch=2, seq=8.
    B, S, D = 2, 8, 256
    key = jax.random.PRNGKey(0)
    kx, kw, kb, kg, kbt = jax.random.split(key, 5)

    x = jax.random.normal(kx, (B, S, D), dtype=jnp.float32)

    # Deterministic synthetic parameters (non-trivial gamma/beta so the
    # LayerNorm-affine fold is actually exercised).
    gamma = 1.0 + 0.1 * jax.random.normal(kg, (D,), dtype=jnp.float32)
    beta = 0.1 * jax.random.normal(kbt, (D,), dtype=jnp.float32)
    bound = 1.0 / jnp.sqrt(D)
    weight = jax.random.uniform(kw, (D, D), jnp.float32, -bound, bound)  # (out, in)
    bias = jax.random.uniform(kb, (D,), jnp.float32, -bound, bound)

    # One-time parameter prep (fold + transpose + bf16 cast), then the kernel.
    wt_folded, b_folded = prepare_mlp_params(gamma, beta, weight, bias)
    out = mlp_forward(x, wt_folded, b_folded)
    out = jax.block_until_ready(out)

    # Reference in plain f32 JAX (same math as the PyTorch forward).
    mean = jnp.mean(x, axis=-1, keepdims=True)
    var = jnp.mean((x - mean) ** 2, axis=-1, keepdims=True)
    xn = (x - mean) / jnp.sqrt(var + EPS) * gamma + beta
    ref = xn @ weight.T + bias
    # Tolerance relaxed vs. pure-f32 because the matmul inputs are bf16
    # (f32 accumulation); observed error is a few 1e-3 at D=256.
    assert jnp.allclose(out, ref, atol=3e-2, rtol=3e-2), "mismatch vs reference"

    print("KERNEL_OK")
</pallas_src>

<mosaic_0001>
module attributes {stable_mosaic.version = 11 : i64} {
  func.func @_mlp_kernel(%arg0: i32, %arg1: i32, %arg2: memref<16x256xf32, #tpu.memory_space<vmem>>, %arg3: memref<256x256xbf16, #tpu.memory_space<vmem>>, %arg4: memref<1x256xf32, #tpu.memory_space<vmem>>, %arg5: memref<16x256xf32, #tpu.memory_space<vmem>>, %arg6: memref<16x256xbf16, #tpu.memory_space<vmem>>) attributes {dimension_semantics = [#tpu.dimension_semantics<parallel>, #tpu.dimension_semantics<arbitrary>], iteration_bounds = array<i64: 1, 1>, scalar_prefetch = 0 : i64, scratch_operands = 1 : i64, tpu.core_type = #tpu.core_type<tc>, window_params = [{transform_indices = @transform_0, window_bounds = array<i64: 16, 256>}, {transform_indices = @transform_1, window_bounds = array<i64: 256, 256>}, {transform_indices = @transform_2, window_bounds = array<i64: 1, 256>}, {transform_indices = @transform_3, window_bounds = array<i64: 16, 256>}]} {
    %c0_i32 = arith.constant 0 : i32
    %0 = arith.cmpi eq, %arg1, %c0_i32 : i32
    %1 = arith.extui %0 : i1 to i32
    %c0_i32_0 = arith.constant 0 : i32
    %2 = arith.cmpi ne, %1, %c0_i32_0 : i32
    scf.if %2 {
      %c0_8 = arith.constant 0 : index
      %c0_9 = arith.constant 0 : index
      %10 = vector.load %arg2[%c0_8, %c0_9] : memref<16x256xf32, #tpu.memory_space<vmem>>, vector<16x256xf32>
      %cst_10 = arith.constant dense<0.000000e+00> : vector<16xf32>
      %11 = vector.multi_reduction <add>, %10, %cst_10 [1] : vector<16x256xf32> to vector<16xf32>
      %12 = vector.shape_cast %11 : vector<16xf32> to vector<16x1xf32>
      %cst_11 = arith.constant 2.560000e+02 : f32
      %13 = vector.broadcast %cst_11 : f32 to vector<16x1xf32>
      %14 = arith.divf %12, %13 : vector<16x1xf32>
      %15 = vector.broadcast %14 : vector<16x1xf32> to vector<16x256xf32>
      %16 = arith.subf %10, %15 : vector<16x256xf32>
      %17 = arith.mulf %16, %16 : vector<16x256xf32>
      %cst_12 = arith.constant dense<0.000000e+00> : vector<16xf32>
      %18 = vector.multi_reduction <add>, %17, %cst_12 [1] : vector<16x256xf32> to vector<16xf32>
      %19 = vector.shape_cast %18 : vector<16xf32> to vector<16x1xf32>
      %cst_13 = arith.constant 2.560000e+02 : f32
      %20 = vector.broadcast %cst_13 : f32 to vector<16x1xf32>
      %21 = arith.divf %19, %20 : vector<16x1xf32>
      %cst_14 = arith.constant 9.99999974E-6 : f32
      %22 = vector.broadcast %cst_14 : f32 to vector<16x1xf32>
      %23 = arith.addf %21, %22 : vector<16x1xf32>
      %24 = math.rsqrt %23 : vector<16x1xf32>
      %25 = vector.broadcast %24 : vector<16x1xf32> to vector<16x256xf32>
      %26 = arith.mulf %16, %25 : vector<16x256xf32>
      %27 = arith.truncf %26 : vector<16x256xf32> to vector<16x256xbf16>
      %c0_15 = arith.constant 0 : index
      %c0_16 = arith.constant 0 : index
      %28 = vector.load %arg6[%c0_15, %c0_16] : memref<16x256xbf16, #tpu.memory_space<vmem>>, vector<16x256xbf16>
      tpu.vector_store %arg6[%c0_15, %c0_16], %27 {strides = array<i32>} : memref<16x256xbf16, #tpu.memory_space<vmem>>, vector<16x256xbf16>,
    } else {
    }
    %c0 = arith.constant 0 : index
    %c0_1 = arith.constant 0 : index
    %3 = vector.load %arg6[%c0, %c0_1] : memref<16x256xbf16, #tpu.memory_space<vmem>>, vector<16x256xbf16>
    %c0_2 = arith.constant 0 : index
    %c0_3 = arith.constant 0 : index
    %4 = vector.load %arg3[%c0_2, %c0_3] : memref<256x256xbf16, #tpu.memory_space<vmem>>, vector<256x256xbf16>
    %cst = arith.constant dense<0.000000e+00> : vector<16x256xf32>
    %5 = tpu.matmul %3, %4, %cst {dimension_numbers = #tpu.dot_dimension_numbers<[1], [0], [0], [1], [0, 0, 1, 1], [], []>} : vector<16x256xbf16>, vector<256x256xbf16>, vector<16x256xf32> -> vector<16x256xf32>
    %c0_4 = arith.constant 0 : index
    %c0_5 = arith.constant 0 : index
    %6 = vector.load %arg4[%c0_4, %c0_5] : memref<1x256xf32, #tpu.memory_space<vmem>>, vector<1x256xf32>
    %7 = vector.broadcast %6 : vector<1x256xf32> to vector<16x256xf32>
    %8 = arith.addf %5, %7 : vector<16x256xf32>
    %c0_6 = arith.constant 0 : index
    %c0_7 = arith.constant 0 : index
    %9 = vector.load %arg5[%c0_6, %c0_7] : memref<16x256xf32, #tpu.memory_space<vmem>>, vector<16x256xf32>
    tpu.vector_store %arg5[%c0_6, %c0_7], %8 {strides = array<i32>} : memref<16x256xf32, #tpu.memory_space<vmem>>, vector<16x256xf32>,
    return
  }
  func.func @transform_0(%arg0: i32, %arg1: i32) -> (i32, i32) {
    %c0_i32 = arith.constant 0 : i32
    %c0_i32_0 = arith.constant 0 : i32
    return %arg0, %c0_i32 : i32, i32
  }
  func.func @transform_1(%arg0: i32, %arg1: i32) -> (i32, i32) {
    %c0_i32 = arith.constant 0 : i32
    %c0_i32_0 = arith.constant 0 : i32
    return %c0_i32, %arg1 : i32, i32
  }
  func.func @transform_2(%arg0: i32, %arg1: i32) -> (i32, i32) {
    %c0_i32 = arith.constant 0 : i32
    %c0_i32_0 = arith.constant 0 : i32
    return %c0_i32, %arg1 : i32, i32
  }
  func.func @transform_3(%arg0: i32, %arg1: i32) -> (i32, i32) {
    %c0_i32 = arith.constant 0 : i32
    return %arg0, %arg1 : i32, i32
  }
}

</mosaic_0001>

<bundles_post_ra>
// kernel: tpu_custom_call.1
= control target key start
LH: loop header
LB: loop body
LE: loop exit
PB: predicated region body
PF: predicated region fallthrough
CT: control target
= control target key end

     0   :  { %8 = vsyncpa [#allocation4], 0  ;;  %s779_s0 = inlined_call_operand.hbm [shape: f32[16,256], index: 0, kind: input, shape index: {}]   ;;  %s780_s1 = inlined_call_operand.hbm [shape: bf16[256,256], index: 1, kind: input, shape index: {}]   ;;  %s781_s2 = inlined_call_operand.hbm [shape: f32[1,256], index: 2, kind: input, shape index: {}]   ;;  %s782_s3 = inlined_call_operand.hbm [shape: f32[16,256], index: 3, kind: output, shape index: {}]  }
   0x1   :  { %9 = vsyncpa [#allocation7], 0  ;;  %s28_s14 = sshll.u32 %s780_s1, 4  ;;  %s29_s14 = int_to_ptr.hbm [resolvable:$true] %s28_s14 }
   0x2   :  { %10 = vsyncpa [#allocation5], 0  ;;  %s706_s15 = smov [#allocation6]   ;;  %s15_s19 = sshll.u32 %s779_s0, 4  ;;  %s16_s19 = int_to_ptr.hbm [resolvable:$true] %s15_s19 }
   0x3   :  { %s30_s16 = sshll.u32 %s706_s15, 4  ;;  %s707_s20 = smov 128   ;;  %s31_s16 = int_to_ptr.vmem [resolvable:$true] %s30_s16 }
   0x4   :  { %s708_s21 = smov 8   ;;  %s709_s22 = smov [#allocation3]  }
   0x5   :  { %36 = dma.hbm_to_vmem [thread:$0]  %s29_s14, 4096, %s31_s16, [#allocation7], %s707_s20, %s707_s20, %s708_s21  }
   0x6   :  { %s17_s23 = sshll.u32 %s709_s22, 4  ;;  %s710_s24 = smov 256   ;;  %s18_s23 = int_to_ptr.vmem [resolvable:$true] %s17_s23 }
   0x7   :  { %s711_s25 = smov 16   ;;  %s42_s27 = sshll.u32 %s781_s2, 4  ;;  %s43_s27 = int_to_ptr.hbm [resolvable:$true] %s42_s27 }
   0x8   :  { %23 = dma.hbm_to_vmem [thread:$0]  %s16_s19, 512, %s18_s23, [#allocation4], %s710_s24, %s710_s24, %s711_s25  }
   0x9   :  { %s712_s28 = smov [#allocation8]  }
   0xa   :  { %s44_s0 = sshll.u32 %s712_s28, 4  ;;  %s45_s0 = int_to_ptr.vmem [resolvable:$true] %s44_s0 }
   0xb   :  { %47 = dma.hbm_to_vmem [thread:$0]  %s43_s27, 32, %s45_s0, [#allocation7]  }
   0xc   :  { %700 = dma.done.wait [#allocation4], 512  }
   0xd   :  { %701 = vsyncadd [#allocation4], 4294966784 }
   0xe   :  { %702 = dma.done.wait [#allocation7], 4128  }
   0xf   :  { %703 = vsyncadd [#allocation7], 4294963168  ;;  %v64_v0 = vld [vmem:[#allocation3] sm:$0xff]  ;;  %v65_v1 = vld [vmem:[#allocation3 + $0x8] sm:$0xff]  ;;  %v713_v6 = vmov 256.0   ;;  %s714_s2 = smov [#allocation9]  }
  0x10   :  { %v68_v2 = vadd.f32 %v65_v1, %v64_v0  ;;  %v66_v3 = vld [vmem:[#allocation3 + $0x10] sm:$0xff]  ;;  %v67_v4 = vld [vmem:[#allocation3 + $0x18] sm:$0xff]  ;;  %598 = vrcp.f32 %v713_v6  ;;  %v477_v39 = vld [vmem:[#allocation6 + $0x60] sm:$0xf]  ;;  %s403_s29 = sshll.u32 %s714_s2, 4  ;;  %s405_s5 = sshll.u32 %s782_s3, 4  ;;  %s404_s29 = int_to_ptr.vmem [resolvable:$true] %s403_s29  ;;  %s406_s5 = int_to_ptr.hbm [resolvable:$true] %s405_s5 }
  0x11   :  { %v71_v5 = vadd.f32 %v67_v4, %v66_v3  ;;  %v485_v27 = vld [vmem:[#allocation6 + $0x70] sm:$0xf]  ;;  %v572_v28 = vld [vmem:[#allocation6 + $0x74] sm:$0xf0]  ;;  %v571_v32 = vld [vmem:[#allocation6 + $0x74] sm:$0xf] }
  0x12   :  { %69 = vadd.xlane.f32.xlu0 %v68_v2  ;;  %v549_v29 = vld [vmem:[#allocation6 + $0xf0] sm:$0xf]  ;;  %v486_v30 = vor.u32 %v572_v28, %v485_v27  ;;  %v588_v31 = vld [vmem:[#allocation6 + $0xf4] sm:$0xf0]  ;;  %v487_v33 = vld [vmem:[#allocation6 + $0x78] sm:$0xf0] }
  0x13   :  { %v550_v34 = vor.u32 %v588_v31, %v549_v29  ;;  %v490_v35 = vor.u32 %v571_v32, %v487_v33  ;;  %v587_v36 = vld [vmem:[#allocation6 + $0xf4] sm:$0xf]  ;;  %v551_v37 = vld [vmem:[#allocation6 + $0xf8] sm:$0xf0]  ;;  %v570_v40 = vld [vmem:[#allocation6 + $0x64] sm:$0xf0] }
  0x14   :  { %339 = vmatpush.bf16.msra.mxu0 %v486_v30  ;;  %v554_v38 = vor.u32 %v587_v36, %v551_v37  ;;  %v541_v41 = vld [vmem:[#allocation6 + $0xe0] sm:$0xf]  ;;  %v478_v42 = vor.u32 %v570_v40, %v477_v39  ;;  %v586_v43 = vld [vmem:[#allocation6 + $0xe4] sm:$0xf0]  ;;  %v569_v44 = vld [vmem:[#allocation6 + $0x64] sm:$0xf] }
  0x15   :  { %353 = vmatpush.bf16.msra.mxu1 %v550_v34  ;;  %367 = vmatpush.bf16.msra.mxu2 %v490_v35  ;;  %v479_v45 = vld [vmem:[#allocation6 + $0x68] sm:$0xf0]  ;;  %v542_v46 = vor.u32 %v586_v43, %v541_v41  ;;  %v585_v48 = vld [vmem:[#allocation6 + $0xe4] sm:$0xf]  ;;  %v469_v51 = vld [vmem:[#allocation6 + $0x50] sm:$0xf] }
  0x16   :  { %v599_v7 = vpop.eup %598  ;;  %381 = vmatpush.bf16.msra.mxu3 %v554_v38  ;;  %v482_v47 = vor.u32 %v569_v44, %v479_v45  ;;  %v543_v49 = vld [vmem:[#allocation6 + $0xe8] sm:$0xf0]  ;;  %v568_v52 = vld [vmem:[#allocation6 + $0x54] sm:$0xf0]  ;;  %v533_v53 = vld [vmem:[#allocation6 + $0xd0] sm:$0xf] }
  0x17   :  { %v75_v8 = vmul.f32 256.0, %v599_v7  ;;  %vm79_vm0 = vweird.f32 %v599_v7  ;;  %v546_v50 = vor.u32 %v585_v48, %v543_v49  ;;  %v470_v54 = vor.u32 %v568_v52, %v469_v51  ;;  %v584_v55 = vld [vmem:[#allocation6 + $0xd4] sm:$0xf0]  ;;  %v567_v56 = vld [vmem:[#allocation6 + $0x54] sm:$0xf] }
  0x18   :  { %340 = vmatpush.bf16.msra.mxu0 %v478_v42  ;;  %v471_v57 = vld [vmem:[#allocation6 + $0x58] sm:$0xf0]  ;;  %v534_v58 = vor.u32 %v584_v55, %v533_v53  ;;  %v583_v60 = vld [vmem:[#allocation6 + $0xd4] sm:$0xf]  ;;  %v461_v63 = vld [vmem:[#allocation6 + $0x40] sm:$0xf] }
  0x19   :  { %v76_v9 = vsub.f32 1.0, %v75_v8  ;;  %354 = vmatpush.bf16.msra.mxu1 %v542_v46  ;;  %368 = vmatpush.bf16.msra.mxu2 %v482_v47  ;;  %v474_v59 = vor.u32 %v567_v56, %v471_v57  ;;  %v535_v61 = vld [vmem:[#allocation6 + $0xd8] sm:$0xf0]  ;;  %v581_v8 = vld [vmem:[#allocation6 + $0xc4] sm:$0xf] }
  0x1a   :  { %72 = vadd.xlane.f32.xlu0 %v71_v5  ;;  %382 = vmatpush.bf16.msra.mxu3 %v546_v50  ;;  %v538_v62 = vor.u32 %v583_v60, %v535_v61  ;;  %v463_v5 = vld [vmem:[#allocation6 + $0x48] sm:$0xf0]  ;;  %v445_v28 = vld [vmem:[#allocation6 + $0x20] sm:$0xf]  ;;  %v562_v29 = vld [vmem:[#allocation6 + $0x24] sm:$0xf0] }
  0x1b   :  { %v77_v10 = vmul.f32 %v599_v7, %v76_v9  ;;  %v527_v9 = vld [vmem:[#allocation6 + $0xc8] sm:$0xf0]  ;;  %v509_v30 = vld [vmem:[#allocation6 + $0xa0] sm:$0xf]  ;;  %v446_v32 = vor.u32 %v562_v29, %v445_v28  ;;  %v578_v33 = vld [vmem:[#allocation6 + $0xa4] sm:$0xf0] }
  0x1c   :  { %341 = vmatpush.bf16.msra.mxu0 %v470_v54  ;;  %v561_v34 = vld [vmem:[#allocation6 + $0x24] sm:$0xf]  ;;  %v447_v35 = vld [vmem:[#allocation6 + $0x28] sm:$0xf0]  ;;  %v510_v37 = vor.u32 %v578_v33, %v509_v30  ;;  %v437_v43 = vld [vmem:[#allocation6 + $0x10] sm:$0xf] }
  0x1d   :  { %v78_v11 = vadd.f32 %v599_v7, %v77_v10  ;;  %355 = vmatpush.bf16.msra.mxu1 %v534_v58  ;;  %369 = vmatpush.bf16.msra.mxu2 %v474_v59  ;;  %v530_v10 = vor.u32 %v581_v8, %v527_v9  ;;  %v450_v38 = vor.u32 %v561_v34, %v447_v35  ;;  %v577_v39 = vld [vmem:[#allocation6 + $0xa4] sm:$0xf]  ;;  %v511_v40 = vld [vmem:[#allocation6 + $0xa8] sm:$0xf0]  ;;  %v560_v44 = vld [vmem:[#allocation6 + $0x14] sm:$0xf0] }
  0x1e   :  { %383 = vmatpush.bf16.msra.mxu3 %v538_v62  ;;  %v514_v41 = vor.u32 %v577_v39, %v511_v40  ;;  %v438_v45 = vor.u32 %v560_v44, %v437_v43  ;;  %v501_v46 = vld [vmem:[#allocation6 + $0x90] sm:$0xf]  ;;  %v576_v47 = vld [vmem:[#allocation6 + $0x94] sm:$0xf0]  ;;  %v559_v48 = vld [vmem:[#allocation6 + $0x14] sm:$0xf] }
  0x1f   :  { %v747_v12 = vsel %vm79_vm0, %v599_v7, %v78_v11  ;;  %v453_v11 = vld [vmem:[#allocation6 + $0x30] sm:$0xf]  ;;  %v502_v49 = vor.u32 %v576_v47, %v501_v46  ;;  %v439_v50 = vld [vmem:[#allocation6 + $0x18] sm:$0xf0]  ;;  %v575_v51 = vld [vmem:[#allocation6 + $0x94] sm:$0xf] }
  0x20   :  { %v503_v52 = vld [vmem:[#allocation6 + $0x98] sm:$0xf0]  ;;  %v442_v53 = vor.u32 %v559_v48, %v439_v50  ;;  %v429_v55 = vld [vmem:[#allocation6] sm:$0xf]  ;;  %v558_v56 = vld [vmem:[#allocation6 + $0x4] sm:$0xf0] }
  0x21   :  { %v506_v54 = vor.u32 %v575_v51, %v503_v52  ;;  %v493_v57 = vld [vmem:[#allocation6 + $0x80] sm:$0xf]  ;;  %v430_v58 = vor.u32 %v558_v56, %v429_v55  ;;  %v574_v59 = vld [vmem:[#allocation6 + $0x84] sm:$0xf0]  ;;  %v557_v60 = vld [vmem:[#allocation6 + $0x4] sm:$0xf] }
  0x22   :  { %384 = vmatpush.bf16.msra.mxu3 %v530_v10  ;;  %v431_v61 = vld [vmem:[#allocation6 + $0x8] sm:$0xf0]  ;;  %v163_v34 = vld [vmem:[#allocation8] sm:$0x3] }
  0x23   :  { %v165_v35 = vperm.slane %v163_v34, 0  ;;  %v166_v39 = vperm.slane %v163_v34, 1 }
  0x85   :  { %v70_v13 = vpop.xlane.xlu0 %69 }
  0x86   :  { %v81_v14 = vmul.f32 %v747_v12, %v70_v13  ;;  %v564_v13 = vld [vmem:[#allocation6 + $0x34] sm:$0xf0] }
  0x88   :  { %v750_v15 = vsub.f32 %v64_v0, %v81_v14  ;;  %v752_v16 = vsub.f32 %v65_v1, %v81_v14  ;;  %v566_v0 = vld [vmem:[#allocation6 + $0x44] sm:$0xf0]  ;;  %v525_v1 = vld [vmem:[#allocation6 + $0xc0] sm:$0xf]  ;;  %v517_v14 = vld [vmem:[#allocation6 + $0xb0] sm:$0xf] }
  0x89   :  { %v462_v2 = vor.u32 %v566_v0, %v461_v63  ;;  %v494_v63 = vor.u32 %v574_v59, %v493_v57  ;;  %v434_v0 = vor.u32 %v557_v60, %v431_v61 }
  0x8a   :  { %v87_v17 = vmul.f32 %v750_v15, %v750_v15  ;;  %v88_v18 = vmul.f32 %v752_v16, %v752_v16 }
  0x8b   :  { %342 = vmatpush.bf16.msra.mxu0 %v462_v2  ;;  %v495_v2 = vld [vmem:[#allocation6 + $0x88] sm:$0xf0] }
  0x8c   :  { %v91_v19 = vadd.f32 %v88_v18, %v87_v17  ;;  %v454_v17 = vor.u32 %v564_v13, %v453_v11  ;;  %v580_v18 = vld [vmem:[#allocation6 + $0xb4] sm:$0xf0] }
  0x8d   :  { %v73_v20 = vpop.xlane.xlu0 %72 }
  0x8e   :  { %v82_v21 = vmul.f32 %v747_v12, %v73_v20  ;;  %92 = vadd.xlane.f32.xlu1 %v91_v19  ;;  %v563_v19 = vld [vmem:[#allocation6 + $0x34] sm:$0xf]  ;;  %v455_v20 = vld [vmem:[#allocation6 + $0x38] sm:$0xf0] }
  0x8f   :  { %343 = vmatpush.bf16.msra.mxu0 %v454_v17 }
  0x90   :  { %v759_v22 = vsub.f32 %v66_v3, %v82_v21  ;;  %v761_v23 = vsub.f32 %v67_v4, %v82_v21  ;;  %v582_v3 = vld [vmem:[#allocation6 + $0xc4] sm:$0xf0]  ;;  %v565_v4 = vld [vmem:[#allocation6 + $0x44] sm:$0xf]  ;;  %v518_v21 = vor.u32 %v580_v18, %v517_v14 }
  0x91   :  { %v526_v6 = vor.u32 %v582_v3, %v525_v1  ;;  %v466_v7 = vor.u32 %v565_v4, %v463_v5  ;;  %v573_v1 = vld [vmem:[#allocation6 + $0x84] sm:$0xf] }
  0x92   :  { %v89_v24 = vmul.f32 %v759_v22, %v759_v22  ;;  %v90_v25 = vmul.f32 %v761_v23, %v761_v23  ;;  %v498_v4 = vor.u32 %v573_v1, %v495_v2 }
  0x93   :  { %356 = vmatpush.bf16.msra.mxu1 %v526_v6  ;;  %370 = vmatpush.bf16.msra.mxu2 %v466_v7 }
  0x94   :  { %v94_v26 = vadd.f32 %v90_v25, %v89_v24  ;;  %v458_v24 = vor.u32 %v563_v19, %v455_v20  ;;  %v579_v25 = vld [vmem:[#allocation6 + $0xb4] sm:$0xf]  ;;  %344 = vmatpush.bf16.msra.mxu0 %v446_v32 }
  0x96   :  { %95 = vadd.xlane.f32.xlu1 %v94_v26  ;;  %v519_v26 = vld [vmem:[#allocation6 + $0xb8] sm:$0xf0] }
  0x97   :  { %v522_v27 = vor.u32 %v579_v25, %v519_v26  ;;  %357 = vmatpush.bf16.msra.mxu1 %v518_v21  ;;  %371 = vmatpush.bf16.msra.mxu2 %v458_v24 }
  0x98   :  { %345 = vmatpush.bf16.msra.mxu0 %v438_v45 }
  0x99   :  { %385 = vmatpush.bf16.msra.mxu3 %v522_v27 }
  0x9b   :  { %358 = vmatpush.bf16.msra.mxu1 %v510_v37  ;;  %372 = vmatpush.bf16.msra.mxu2 %v450_v38 }
  0x9c   :  { %346 = vmatpush.bf16.msra.mxu0 %v430_v58 }
  0x9d   :  { %386 = vmatpush.bf16.msra.mxu3 %v514_v41 }
  0x9f   :  { %359 = vmatpush.bf16.msra.mxu1 %v502_v49  ;;  %373 = vmatpush.bf16.msra.mxu2 %v442_v53 }
  0xa1   :  { %387 = vmatpush.bf16.msra.mxu3 %v506_v54 }
  0xa3   :  { %360 = vmatpush.bf16.msra.mxu1 %v494_v63  ;;  %374 = vmatpush.bf16.msra.mxu2 %v434_v0 }
  0xa5   :  { %388 = vmatpush.bf16.msra.mxu3 %v498_v4 }
 0x101   :  { %v93_v31 = vpop.xlane.xlu1 %92 }
 0x102   :  { %v97_v36 = vmul.f32 %v93_v31, %v747_v12 }
 0x104   :  { %v99_v42 = vadd.f32 1e-05, %v97_v36 }
 0x106   :  { %600 = vrsqrt.f32 %v99_v42  ;;  %vm107_vm2 = vweird.f32 %v99_v42 }
 0x109   :  { %v96_v62 = vpop.xlane.xlu1 %95 }
 0x10a   :  { %v98_v3 = vmul.f32 %v96_v62, %v747_v12 }
 0x10c   :  { %v601_v5 = vpop.eup %600  ;;  %v100_v6 = vadd.f32 1e-05, %v98_v3 }
 0x10d   :  { %v102_v7 = vmul.f32 %v601_v5, %v99_v42  ;;  %vm108_vm1 = vweird.f32 %v601_v5 }
 0x10e   :  { %602 = vrsqrt.f32 %v100_v6  ;;  %vm109_vm3 = vmor %vm107_vm2, %vm108_vm1  ;;  %vm117_vm5 = vweird.f32 %v100_v6 }
 0x10f   :  { %v103_v8 = vmul.f32 %v601_v5, %v102_v7 }
 0x111   :  { %v104_v9 = vmul.f32 0.5, %v103_v8 }
 0x113   :  { %v105_v10 = vsub.f32 1.5, %v104_v9 }
 0x114   :  { %v603_v11 = vpop.eup %602 }
 0x115   :  { %v106_v13 = vmul.f32 %v601_v5, %v105_v10  ;;  %v112_v14 = vmul.f32 %v603_v11, %v100_v6  ;;  %vm118_vm4 = vweird.f32 %v603_v11 }
 0x116   :  { %vm119_vm6 = vmor %vm117_vm5, %vm118_vm4 }
 0x117   :  { %v110_v17 = vsel %vm109_vm3, %v601_v5, %v106_v13  ;;  %v113_v12 = vmul.f32 %v603_v11, %v112_v14 }
 0x118   :  { %v121_v18 = vmul.f32 %v110_v17, %v750_v15  ;;  %v122_v19 = vmul.f32 %v110_v17, %v752_v16 }
 0x119   :  { %v114_v20 = vmul.f32 0.5, %v113_v12 }
 0x11a   :  { %v125_v21 = vpack.c.bf16 %v122_v19, %v121_v18 }
 0x11b   :  { %v115_v24 = vsub.f32 1.5, %v114_v20 }
 0x11c   :  { %127 = vst [vmem:[#allocation2] sm:$0xff] %v125_v21 }
 0x11d   :  { %v116_v25 = vmul.f32 %v603_v11, %v115_v24 }
 0x11f   :  { %v120_v26 = vsel %vm119_vm6, %v603_v11, %v116_v25 }
 0x120   :  { %v123_v27 = vmul.f32 %v120_v26, %v759_v22  ;;  %v124_v28 = vmul.f32 %v120_v26, %v761_v23 }
 0x122   :  { %v126_v29 = vpack.c.bf16 %v124_v28, %v123_v27 }
 0x123   :  { %v421_v30 = vld [vmem:[#allocation2] sm:$0xf]  ;;  %v555_v15 = vld [vmem:[#allocation2 + $0x4] sm:$0xf] }
 0x124   :  { %128 = vst [vmem:[#allocation2 + $0x8] sm:$0xff] %v126_v29 }
 0x12b   :  { %v556_v31 = vld [vmem:[#allocation2 + $0x4] sm:$0xf0]  ;;  %v423_v32 = vld [vmem:[#allocation2 + $0x8] sm:$0xf0] }
 0x12c   :  { %v422_v16 = vor.u32 %v556_v31, %v421_v30  ;;  %v426_v33 = vor.u32 %v555_v15, %v423_v32 }
 0x12e   :  { %347 = vmatmul.bf16.vlgmr.msra.gmra.mxu0 %v422_v16  ;;  %361 = vmatmul.bf16.vlgmr.msra.gmra.mxu1 %v426_v33 }
 0x12f   :  { %375 = vmatmul.bf16.vlgmr.msra.gmra.mxu2 %v422_v16  ;;  %389 = vmatmul.bf16.vlgmr.msra.gmra.mxu3 %v426_v33 }
 0x1ab   :  { %v348_v36 = vpop.f32.mrf.mxu0  ;;  %v362_v37 = vpop.f32.mrf.mxu1 }
 0x1ac   :  { %v349_v38 = vadd.f32 %v348_v36, %v165_v35 }
 0x1ae   :  { %v363_v22 = vadd.f32 %v362_v37, %v349_v38 }
 0x1b0   :  { %395 = vst [vmem:[#allocation9] sm:$0xff] %v363_v22 }
 0x1b2   :  { %v376_v23 = vpop.f32.mrf.mxu2  ;;  %v390_v40 = vpop.f32.mrf.mxu3 }
 0x1b3   :  { %v377_v41 = vadd.f32 %v376_v23, %v166_v39  ;;  %v350_v42 = vpop.f32.mrf.mxu0  ;;  %v364_v45 = vpop.f32.mrf.mxu1 }
 0x1b4   :  { %v351_v43 = vadd.f32 %v350_v42, %v165_v35 }
 0x1b5   :  { %v391_v44 = vadd.f32 %v390_v40, %v377_v41 }
 0x1b6   :  { %v365_v46 = vadd.f32 %v364_v45, %v351_v43 }
 0x1b7   :  { %396 = vst [vmem:[#allocation9 + $0x8] sm:$0xff] %v391_v44 }
 0x1b8   :  { %397 = vst [vmem:[#allocation9 + $0x10] sm:$0xff] %v365_v46 }
 0x1ba   :  { %v378_v47 = vpop.f32.mrf.mxu2  ;;  %v392_v49 = vpop.f32.mrf.mxu3 }
 0x1bb   :  { %v379_v48 = vadd.f32 %v378_v47, %v166_v39 }
 0x1bd   :  { %v393_v50 = vadd.f32 %v392_v49, %v379_v48 }
 0x1bf   :  { %398 = vst [vmem:[#allocation9 + $0x18] sm:$0xff] %v393_v50 }
 0x1c0   :  { %411 = dma.vmem_to_hbm [thread:$0]  %s404_s29, 512, %s406_s5, [#allocation5], %s710_s24, %s710_s24, %s711_s25  }
 0x1c1   :  { %704 = dma.done.wait [#allocation5], 512  }
 0x1c2   :  { %705 = vsyncadd [#allocation5], 4294966784 }
 0x1c3   :  { %416 = vsyncpa [#allocation4], 1 }
 0x1c4   :  { %417 = vsyncpa [#allocation7], 1 }
 0x1c5   :  { %418 = vsyncpa [#allocation5], 1 }

</bundles_post_ra>
